<compile_context>
chip_gen: v5e
topology: v5e:2x2
jax: 0.10.0
libtpu: 0.0.40
codegen_flags: <defaults>
</compile_context>

<pallas_src>
import jax
import jax.numpy as jnp
import numpy as np
from jax.experimental import pallas as pl
from jax.experimental.pallas import tpu as pltpu


# ---------------------------- Pallas kernel ----------------------------

def _fused_skconv_kernel(x_ref, we_ref, be_ref, wa_ref, ba_ref, o_ref):
    # fea_U tile: bf16 operands, f32 accumulation on the MXU.
    u = jnp.dot(x_ref[...], we_ref[...], preferred_element_type=jnp.float32)
    u = u + be_ref[...]                                        # (tile_hw, 256) f32
    # Channel softmax over 256 lanes (the cat-x4 is folded into wa scaling, exact).
    m = jnp.max(u, axis=-1, keepdims=True)
    e = jnp.exp(u - m)
    p = e * pl.reciprocal(jnp.sum(e, axis=-1, keepdims=True), approx=False)
    # Folded conv2: (tile_hw, 256) @ (256, 256) + bias.
    att = jnp.dot(p.astype(wa_ref.dtype), wa_ref[...],
                  preferred_element_type=jnp.float32) + ba_ref[...]
    # fea_v = fea_U * attention; XLU transpose so the stored block is channel-major
    # (NCHW layout) -> no XLA-side transpose after the kernel.
    v = u * att                                                # (tile_hw, 256)
    o_ref[...] = jnp.transpose(v, (1, 0)).astype(o_ref.dtype)  # (256, tile_hw)


def _choose_tile_hw(hw, tile_max=1024):
    """Rows-per-image tile. Returns (tile, padded_hw)."""
    if hw <= tile_max:
        return hw, hw                         # one tile per image, no padding
    cap = max(256, tile_max - tile_max % 256)
    t = cap
    while t >= 256:                           # prefer a 256-multiple dividing hw
        if hw % t == 0:
            return t, hw
        t -= 256
    return cap, ((hw + cap - 1) // cap) * cap


def fused_skconv(slab, w_eff, b_eff, w_att, b_att, *, tile_hw):
    """fea_v (NCHW-flat) = fea_U * conv2(softmax(cat4(fea_U))),
    with fea_U = slab @ w_eff + b_eff; one grid step per (image, spatial tile)."""
    N, HWp, K = slab.shape
    Cout = w_eff.shape[1]
    return pl.pallas_call(
        _fused_skconv_kernel,
        out_shape=jax.ShapeDtypeStruct((N, Cout, HWp), jnp.float32),
        grid=(N, HWp // tile_hw),
        in_specs=[
            pl.BlockSpec((None, tile_hw, K), lambda n, j: (n, j, 0)),
            pl.BlockSpec((K, Cout), lambda n, j: (0, 0)),
            pl.BlockSpec((1, Cout), lambda n, j: (0, 0)),
            pl.BlockSpec((Cout, Cout), lambda n, j: (0, 0)),
            pl.BlockSpec((1, Cout), lambda n, j: (0, 0)),
        ],
        out_specs=pl.BlockSpec((None, Cout, tile_hw), lambda n, j: (n, 0, j)),
        compiler_params=pltpu.CompilerParams(
            dimension_semantics=("parallel", "parallel"),
            vmem_limit_bytes=48 * 1024 * 1024),
    )(slab, w_eff, b_eff.reshape(1, Cout), w_att, b_att.reshape(1, Cout))


# ------------------------------ glue (JAX) -------------------------------

def _w_1x1(w):   # (Cout, Cin, 1, 1) -> (Cin, Cout)
    return jnp.transpose(w[:, :, 0, 0], (1, 0))


def _valid_taps(dil, H, W):
    """3x3 taps whose dilated offset still overlaps the HxW image.
    Taps entirely outside are identically zero under zero padding -> pruned exactly."""
    taps = []
    for ky in range(3):
        for kx in range(3):
            if abs((ky - 1) * dil) < H and abs((kx - 1) * dil) < W:
                taps.append((ky, kx))
    return taps


def _w_3x3_taps(w, taps):   # (Cout, Cin, 3, 3) -> (len(taps)*Cin, Cout)
    wt = jnp.transpose(w, (2, 3, 1, 0))          # (3, 3, Cin, Cout)
    return jnp.concatenate([wt[ky, kx] for (ky, kx) in taps], axis=0)


def _build_input_slab(x_nhwc_bf16, taps_per_dil):
    """Shared bf16 im2col slab (pruned taps): [x | d6 | d12 | d18] -> (N, H*W, K).

    One pad (max dilation) is shared by all dilated branches; tap order
    (ky, kx, c) matches _w_3x3_taps. padding=dilation => same spatial size.
    """
    N, H, W, C = x_nhwc_bf16.shape
    pad = 18
    xp = jnp.pad(x_nhwc_bf16, ((0, 0), (pad, pad), (pad, pad), (0, 0)))
    cols = [x_nhwc_bf16]
    for dil, taps in zip((6, 12, 18), taps_per_dil):
        off = pad - dil
        for ky, kx in taps:
            cols.append(xp[:, off + ky * dil: off + ky * dil + H,
                           off + kx * dil: off + kx * dil + W, :])
    slab = jnp.concatenate(cols, axis=-1)        # (N, H, W, K) bf16
    return slab.reshape(N, H * W, slab.shape[-1])


def skconv_forward(x_nchw, p, *, tile_hw_max=1024):
    N, Cin, H, W = x_nchw.shape
    x_nhwc = jnp.transpose(x_nchw, (0, 2, 3, 1))
    HW = H * W

    # ---- fold weights in f32 (branch conv -> conv1x1, and conv2's 4x blocks) ----
    wc = _w_1x1(p["c1x1_w"])                       # (512, 256)
    d = wc.shape[0] // 4                           # 128
    taps6 = _valid_taps(6, H, W)
    taps12 = _valid_taps(12, H, W)
    taps18 = _valid_taps(18, H, W)
    w_eff = jnp.concatenate([
        _w_1x1(p["a1_w"]) @ wc[0 * d:1 * d],
        _w_3x3_taps(p["a6_w"], taps6) @ wc[1 * d:2 * d],
        _w_3x3_taps(p["a12_w"], taps12) @ wc[2 * d:3 * d],
        _w_3x3_taps(p["a18_w"], taps18) @ wc[3 * d:4 * d],
    ], axis=0)                                     # (K, 256), K <= 448
    b_eff = (p["a1_b"] @ wc[0 * d:1 * d] + p["a6_b"] @ wc[1 * d:2 * d]
             + p["a12_b"] @ wc[2 * d:3 * d] + p["a18_b"] @ wc[3 * d:4 * d]
             + p["c1x1_b"])                        # (256,)

    w2 = _w_1x1(p["conv2_w"])                      # (1024, 256)
    w_att = 0.25 * (w2[0:256] + w2[256:512] + w2[512:768] + w2[768:1024])
    b_att = p["conv2_b"]

    # ---- bf16 tap-pruned slab (no K padding) + single fused Pallas kernel ----
    slab = _build_input_slab(x_nhwc.astype(jnp.bfloat16),
                             (taps6, taps12, taps18))          # (N, HW, K) bf16
    tile_hw, HWp = _choose_tile_hw(HW, tile_hw_max)
    if HWp != HW:
        slab = jnp.pad(slab, ((0, 0), (0, HWp - HW), (0, 0)))

    fea_v = fused_skconv(slab,
                         w_eff.astype(jnp.bfloat16), b_eff.astype(jnp.float32),
                         w_att.astype(jnp.bfloat16), b_att.astype(jnp.float32),
                         tile_hw=tile_hw)                      # (N, 256, HWp) f32
    if HWp != HW:
        fea_v = fea_v[:, :, :HW]
    fea_v_nchw = fea_v.reshape(N, 256, H, W)       # already channel-major: free
    # F.interpolate to the same size (bilinear, align_corners=False) is identity.
    return jnp.concatenate([x_nchw, fea_v_nchw], axis=1)       # (N, Cin+256, H, W)


# ------------------------- deterministic params --------------------------

def init_params(key, features=16, d=128):
    ks = jax.random.split(key, 12)

    def conv_init(kw, kb, cout, cin, kh, kw_):
        fan_in = cin * kh * kw_
        bound = 1.0 / np.sqrt(fan_in)
        w = jax.random.uniform(kw, (cout, cin, kh, kw_), jnp.float32, -bound, bound)
        b = jax.random.uniform(kb, (cout,), jnp.float32, -bound, bound)
        return w, b

    p = {}
    p["a1_w"], p["a1_b"] = conv_init(ks[0], ks[1], d, features, 1, 1)
    p["a6_w"], p["a6_b"] = conv_init(ks[2], ks[3], d, features, 3, 3)
    p["a12_w"], p["a12_b"] = conv_init(ks[4], ks[5], d, features, 3, 3)
    p["a18_w"], p["a18_b"] = conv_init(ks[6], ks[7], d, features, 3, 3)
    p["c1x1_w"], p["c1x1_b"] = conv_init(ks[8], ks[9], 256, 4 * d, 1, 1)     # Incep.conv1x1
    p["conv2_w"], p["conv2_b"] = conv_init(ks[10], ks[11], 256, 1024, 1, 1)  # SKConv.conv2
    # TODO(synk): fc1/fc/bn/bn1/mean/conv1 (and Incep.conv/mean) are unused in forward.
    return p


# --------------------------- pure-JAX reference ---------------------------

def ref_forward(x, p):
    def conv2d(x_, w, b, dil=1, pad=0):
        y = jax.lax.conv_general_dilated(
            x_, w, (1, 1), ((pad, pad), (pad, pad)),
            rhs_dilation=(dil, dil),
            dimension_numbers=("NCHW", "OIHW", "NCHW"))
        return y + b[None, :, None, None]

    a1 = conv2d(x, p["a1_w"], p["a1_b"])
    a6 = conv2d(x, p["a6_w"], p["a6_b"], 6, 6)
    a12 = conv2d(x, p["a12_w"], p["a12_b"], 12, 12)
    a18 = conv2d(x, p["a18_w"], p["a18_b"], 18, 18)
    fea_U = conv2d(jnp.concatenate([a1, a6, a12, a18], 1), p["c1x1_w"], p["c1x1_b"])
    att = jnp.concatenate([fea_U] * 4, axis=1)
    att = jax.nn.softmax(att, axis=1)
    att = conv2d(att, p["conv2_w"], p["conv2_b"])
    fea_v = fea_U * att
    return jnp.concatenate([x, fea_v], axis=1)


if __name__ == "__main__":
    key = jax.random.PRNGKey(0)
    kx, kp = jax.random.split(key)
    # SKConv(features=16, WH=8, M=2, G=8, r=1, L=128) -> d = max(16, 128) = 128
    N, C, H, W = 2, 16, 8, 8
    x = jax.random.normal(kx, (N, C, H, W), jnp.float32)
    params = init_params(kp, features=C, d=128)

    out = jax.jit(skconv_forward)(x, params)
    out = jax.block_until_ready(out)
    assert out.shape == (N, C + 256, H, W)

    ref = ref_forward(x, params)
    np.testing.assert_allclose(np.asarray(out), np.asarray(ref), rtol=1e-2, atol=1e-2)
    print("KERNEL_OK")
</pallas_src>

<mosaic_0001>
module attributes {stable_mosaic.version = 11 : i64} {
  func.func @_fused_skconv_kernel(%arg0: i32, %arg1: i32, %arg2: memref<1x64x192xbf16, #tpu.memory_space<vmem>>, %arg3: memref<192x256xbf16, #tpu.memory_space<vmem>>, %arg4: memref<1x256xf32, #tpu.memory_space<vmem>>, %arg5: memref<256x256xbf16, #tpu.memory_space<vmem>>, %arg6: memref<1x256xf32, #tpu.memory_space<vmem>>, %arg7: memref<1x256x64xf32, #tpu.memory_space<vmem>>) attributes {dimension_semantics = [#tpu.dimension_semantics<parallel>, #tpu.dimension_semantics<parallel>], iteration_bounds = array<i64: 2, 1>, scalar_prefetch = 0 : i64, scratch_operands = 0 : i64, tpu.core_type = #tpu.core_type<tc>, window_params = [{transform_indices = @transform_0, window_bounds = array<i64: 1, 64, 192>}, {pipeline_mode = #tpu.pipeline_mode<synchronous>, transform_indices = @transform_1, window_bounds = array<i64: 192, 256>}, {pipeline_mode = #tpu.pipeline_mode<synchronous>, transform_indices = @transform_2, window_bounds = array<i64: 1, 256>}, {pipeline_mode = #tpu.pipeline_mode<synchronous>, transform_indices = @transform_3, window_bounds = array<i64: 256, 256>}, {pipeline_mode = #tpu.pipeline_mode<synchronous>, transform_indices = @transform_4, window_bounds = array<i64: 1, 256>}, {transform_indices = @transform_5, window_bounds = array<i64: 1, 256, 64>}]} {
    %c0 = arith.constant 0 : index
    %c0_0 = arith.constant 0 : index
    %c0_1 = arith.constant 0 : index
    %0 = vector.load %arg2[%c0, %c0_0, %c0_1] : memref<1x64x192xbf16, #tpu.memory_space<vmem>>, vector<1x64x192xbf16>
    %1 = vector.shape_cast %0 : vector<1x64x192xbf16> to vector<64x192xbf16>
    %c0_2 = arith.constant 0 : index
    %c0_3 = arith.constant 0 : index
    %2 = vector.load %arg3[%c0_2, %c0_3] : memref<192x256xbf16, #tpu.memory_space<vmem>>, vector<192x256xbf16>
    %cst = arith.constant dense<0.000000e+00> : vector<64x256xf32>
    %3 = tpu.matmul %1, %2, %cst {dimension_numbers = #tpu.dot_dimension_numbers<[1], [0], [0], [1], [0, 0, 1, 1], [], []>} : vector<64x192xbf16>, vector<192x256xbf16>, vector<64x256xf32> -> vector<64x256xf32>
    %c0_4 = arith.constant 0 : index
    %c0_5 = arith.constant 0 : index
    %4 = vector.load %arg4[%c0_4, %c0_5] : memref<1x256xf32, #tpu.memory_space<vmem>>, vector<1x256xf32>
    %5 = vector.broadcast %4 : vector<1x256xf32> to vector<64x256xf32>
    %6 = arith.addf %3, %5 : vector<64x256xf32>
    %cst_6 = arith.constant dense<0xFF800000> : vector<64xf32>
    %7 = vector.multi_reduction <maximumf>, %6, %cst_6 [1] : vector<64x256xf32> to vector<64xf32>
    %8 = vector.shape_cast %7 : vector<64xf32> to vector<64x1xf32>
    %9 = vector.broadcast %8 : vector<64x1xf32> to vector<64x256xf32>
    %10 = arith.subf %6, %9 : vector<64x256xf32>
    %11 = math.exp %10 : vector<64x256xf32>
    %cst_7 = arith.constant dense<0.000000e+00> : vector<64xf32>
    %12 = vector.multi_reduction <add>, %11, %cst_7 [1] : vector<64x256xf32> to vector<64xf32>
    %13 = vector.shape_cast %12 : vector<64xf32> to vector<64x1xf32>
    %14 = tpu.reciprocal %13 : vector<64x1xf32> -> vector<64x1xf32>
    %15 = vector.broadcast %14 : vector<64x1xf32> to vector<64x256xf32>
    %16 = arith.mulf %11, %15 : vector<64x256xf32>
    %17 = arith.truncf %16 : vector<64x256xf32> to vector<64x256xbf16>
    %c0_8 = arith.constant 0 : index
    %c0_9 = arith.constant 0 : index
    %18 = vector.load %arg5[%c0_8, %c0_9] : memref<256x256xbf16, #tpu.memory_space<vmem>>, vector<256x256xbf16>
    %cst_10 = arith.constant dense<0.000000e+00> : vector<64x256xf32>
    %19 = tpu.matmul %17, %18, %cst_10 {dimension_numbers = #tpu.dot_dimension_numbers<[1], [0], [0], [1], [0, 0, 1, 1], [], []>} : vector<64x256xbf16>, vector<256x256xbf16>, vector<64x256xf32> -> vector<64x256xf32>
    %c0_11 = arith.constant 0 : index
    %c0_12 = arith.constant 0 : index
    %20 = vector.load %arg6[%c0_11, %c0_12] : memref<1x256xf32, #tpu.memory_space<vmem>>, vector<1x256xf32>
    %21 = vector.broadcast %20 : vector<1x256xf32> to vector<64x256xf32>
    %22 = arith.addf %19, %21 : vector<64x256xf32>
    %23 = arith.mulf %6, %22 : vector<64x256xf32>
    %24 = tpu.transpose %23, [1, 0] : vector<64x256xf32> -> vector<256x64xf32>
    %c0_13 = arith.constant 0 : index
    %c0_14 = arith.constant 0 : index
    %c0_15 = arith.constant 0 : index
    %25 = vector.load %arg7[%c0_13, %c0_14, %c0_15] : memref<1x256x64xf32, #tpu.memory_space<vmem>>, vector<1x256x64xf32>
    %26 = vector.shape_cast %25 : vector<1x256x64xf32> to vector<256x64xf32>
    %27 = vector.shape_cast %24 : vector<256x64xf32> to vector<1x256x64xf32>
    tpu.vector_store %arg7[%c0_13, %c0_14, %c0_15], %27 {strides = array<i32>} : memref<1x256x64xf32, #tpu.memory_space<vmem>>, vector<1x256x64xf32>,
    return
  }
  func.func @transform_0(%arg0: i32, %arg1: i32) -> (i32, i32, i32) {
    %c0_i32 = arith.constant 0 : i32
    %c0_i32_0 = arith.constant 0 : i32
    return %arg0, %arg1, %c0_i32 : i32, i32, i32
  }
  func.func @transform_1(%arg0: i32, %arg1: i32) -> (i32, i32) {
    %c0_i32 = arith.constant 0 : i32
    %c0_i32_0 = arith.constant 0 : i32
    %c0_i32_1 = arith.constant 0 : i32
    return %c0_i32, %c0_i32_0 : i32, i32
  }
  func.func @transform_2(%arg0: i32, %arg1: i32) -> (i32, i32) {
    %c0_i32 = arith.constant 0 : i32
    %c0_i32_0 = arith.constant 0 : i32
    %c0_i32_1 = arith.constant 0 : i32
    return %c0_i32, %c0_i32_0 : i32, i32
  }
  func.func @transform_3(%arg0: i32, %arg1: i32) -> (i32, i32) {
    %c0_i32 = arith.constant 0 : i32
    %c0_i32_0 = arith.constant 0 : i32
    %c0_i32_1 = arith.constant 0 : i32
    return %c0_i32, %c0_i32_0 : i32, i32
  }
  func.func @transform_4(%arg0: i32, %arg1: i32) -> (i32, i32) {
    %c0_i32 = arith.constant 0 : i32
    %c0_i32_0 = arith.constant 0 : i32
    %c0_i32_1 = arith.constant 0 : i32
    return %c0_i32, %c0_i32_0 : i32, i32
  }
  func.func @transform_5(%arg0: i32, %arg1: i32) -> (i32, i32, i32) {
    %c0_i32 = arith.constant 0 : i32
    %c0_i32_0 = arith.constant 0 : i32
    return %arg0, %c0_i32, %arg1 : i32, i32, i32
  }
}

</mosaic_0001>

<bundles_post_ra>
// kernel: skconv_forward.1
= control target key start
LH: loop header
LB: loop body
LE: loop exit
PB: predicated region body
PF: predicated region fallthrough
CT: control target
= control target key end

     0   :  { %s1800_s18 = smov 0   ;;  %s1802_s19 = smov 0   ;;  %s2459_s0 = inlined_call_operand.vmem [shape: bf16[2,64,192], index: 0, kind: input, shape index: {}]   ;;  %s2460_s1 = inlined_call_operand.vmem [shape: bf16[192,256], index: 1, kind: input, shape index: {}]   ;;  %s2461_s2 = inlined_call_operand.vmem [shape: f32[1,256], index: 2, kind: input, shape index: {}]   ;;  %s2462_s3 = inlined_call_operand.vmem [shape: bf16[256,256], index: 3, kind: input, shape index: {}]   ;;  %s2463_s4 = inlined_call_operand.vmem [shape: f32[1,256], index: 4, kind: input, shape index: {}]   ;;  %s2464_s5 = inlined_call_operand.vmem [shape: f32[2,256,64], index: 5, kind: output, shape index: {}]  }
   0x1   :  { %s1804_s20 = smov 0  }
   0x2 LB: > { %s27_s21 = sadd.s32 1, %s1764_s19  ;;  %p1336_p0 = scmp.ge.s32.totalorder %s1768_s20, 1  ;;  %s1768_s20 = sphi %s1804_s20, %s15_s20   ;;  %s1764_s19 = sphi %s1802_s19, %s2466_s19   ;;  %s1760_s18 = sphi %s1800_s18, %s2465_s18  }
   0x3   : > { %p29_p1 = scmp.ge.s32.totalorder %s27_s21, 2  ;;  %p209_p2 = scmp.lt.s32.totalorder %s1768_s20, 3 }
   0x5   : > { %s2468_s21 = smov (%p29_p1, %s27_s21), 0  ;;  %p210_p3 = pnand %p1336_p0, %p209_p2 }
   0x6   : > { %p246_p4 = scmp.lt.s32.totalorder (!%p210_p3), %s1760_s18, 1 }
   0x7   : > { %213 = sbr.rel (%p210_p3) target bundleno = 882 (0x372), region = 40 }
   0xc   : > { %v1431_v0 = vld [vmem:[%s2460_s1 + $0x70] sm:$0xf]  ;;  %v1632_v1 = vld [vmem:[%s2460_s1 + $0x74] sm:$0xf0]  ;;  %v1631_v2 = vld [vmem:[%s2460_s1 + $0x74] sm:$0xf] }
   0xd   : > { %v1432_v3 = vor.u32 %v1632_v1, %v1431_v0  ;;  %v1433_v4 = vld [vmem:[%s2460_s1 + $0x78] sm:$0xf0]  ;;  %v1423_v5 = vld [vmem:[%s2460_s1 + $0x60] sm:$0xf]  ;;  %v1630_v6 = vld [vmem:[%s2460_s1 + $0x64] sm:$0xf0] }
   0xe   : > { %v1436_v7 = vor.u32 %v1631_v2, %v1433_v4  ;;  %v1629_v8 = vld [vmem:[%s2460_s1 + $0x64] sm:$0xf]  ;;  %v1425_v9 = vld [vmem:[%s2460_s1 + $0x68] sm:$0xf0]  ;;  %v1424_v10 = vor.u32 %v1630_v6, %v1423_v5  ;;  %v1415_v11 = vld [vmem:[%s2460_s1 + $0x50] sm:$0xf] }
   0xf   : > { %472 = vmatpush.bf16.msra.mxu0 %v1432_v3  ;;  %v1428_v12 = vor.u32 %v1629_v8, %v1425_v9  ;;  %v1628_v13 = vld [vmem:[%s2460_s1 + $0x54] sm:$0xf0]  ;;  %v1639_v14 = vld [vmem:[%s2460_s1 + $0xb4] sm:$0xf]  ;;  %v1465_v15 = vld [vmem:[%s2460_s1 + $0xb8] sm:$0xf0] }
  0x10   : > { %530 = vmatpush.bf16.msra.mxu2 %v1436_v7  ;;  %v1627_v16 = vld [vmem:[%s2460_s1 + $0x54] sm:$0xf]  ;;  %v1417_v17 = vld [vmem:[%s2460_s1 + $0x58] sm:$0xf0]  ;;  %v1468_v18 = vor.u32 %v1639_v14, %v1465_v15  ;;  %v1637_v19 = vld [vmem:[%s2460_s1 + $0xa4] sm:$0xf]  ;;  %v1416_v21 = vor.u32 %v1628_v13, %v1415_v11 }
  0x11   : > { %v1457_v20 = vld [vmem:[%s2460_s1 + $0xa8] sm:$0xf0]  ;;  %v1463_v23 = vld [vmem:[%s2460_s1 + $0xb0] sm:$0xf]  ;;  %v1640_v24 = vld [vmem:[%s2460_s1 + $0xb4] sm:$0xf0]  ;;  %v1420_v25 = vor.u32 %v1627_v16, %v1417_v17 }
  0x12   : > { %563 = vmatpush.bf16.msra.mxu3 %v1468_v18  ;;  %v1460_v22 = vor.u32 %v1637_v19, %v1457_v20  ;;  %v1407_v26 = vld [vmem:[%s2460_s1 + $0x40] sm:$0xf]  ;;  %v1626_v27 = vld [vmem:[%s2460_s1 + $0x44] sm:$0xf0]  ;;  %v1464_v28 = vor.u32 %v1640_v24, %v1463_v23  ;;  %v1635_v29 = vld [vmem:[%s2460_s1 + $0x94] sm:$0xf] }
  0x13   : > { %473 = vmatpush.bf16.msra.mxu0 %v1424_v10  ;;  %v1625_v30 = vld [vmem:[%s2460_s1 + $0x44] sm:$0xf]  ;;  %v1409_v31 = vld [vmem:[%s2460_s1 + $0x48] sm:$0xf0]  ;;  %v1449_v32 = vld [vmem:[%s2460_s1 + $0x98] sm:$0xf0]  ;;  %v1408_v35 = vor.u32 %v1626_v27, %v1407_v26 }
  0x14   : > { %531 = vmatpush.bf16.msra.mxu2 %v1428_v12  ;;  %505 = vmatpush.bf16.msra.mxu1 %v1464_v28  ;;  %v1455_v33 = vld [vmem:[%s2460_s1 + $0xa0] sm:$0xf]  ;;  %v1638_v34 = vld [vmem:[%s2460_s1 + $0xa4] sm:$0xf0]  ;;  %v1399_v36 = vld [vmem:[%s2460_s1 + $0x30] sm:$0xf]  ;;  %v1452_v38 = vor.u32 %v1635_v29, %v1449_v32  ;;  %v1412_v40 = vor.u32 %v1625_v30, %v1409_v31 }
  0x15   : > { %v1624_v37 = vld [vmem:[%s2460_s1 + $0x34] sm:$0xf0]  ;;  %v1456_v39 = vor.u32 %v1638_v34, %v1455_v33  ;;  %v1633_v41 = vld [vmem:[%s2460_s1 + $0x84] sm:$0xf]  ;;  %v1441_v42 = vld [vmem:[%s2460_s1 + $0x88] sm:$0xf0] }
  0x16   : > { %564 = vmatpush.bf16.msra.mxu3 %v1460_v22  ;;  %v1447_v43 = vld [vmem:[%s2460_s1 + $0x90] sm:$0xf]  ;;  %v1623_v44 = vld [vmem:[%s2460_s1 + $0x34] sm:$0xf]  ;;  %v1401_v45 = vld [vmem:[%s2460_s1 + $0x38] sm:$0xf0]  ;;  %v1400_v48 = vor.u32 %v1624_v37, %v1399_v36  ;;  %v1444_v49 = vor.u32 %v1633_v41, %v1441_v42 }
  0x17   : > { %474 = vmatpush.bf16.msra.mxu0 %v1416_v21  ;;  %v1636_v46 = vld [vmem:[%s2460_s1 + $0x94] sm:$0xf0]  ;;  %v1439_v50 = vld [vmem:[%s2460_s1 + $0x80] sm:$0xf]  ;;  %v1634_v51 = vld [vmem:[%s2460_s1 + $0x84] sm:$0xf0]  ;;  %v1404_v52 = vor.u32 %v1623_v44, %v1401_v45 }
  0x18   : > { %532 = vmatpush.bf16.msra.mxu2 %v1420_v25  ;;  %506 = vmatpush.bf16.msra.mxu1 %v1456_v39  ;;  %v1448_v47 = vor.u32 %v1636_v46, %v1447_v43  ;;  %v1391_v53 = vld [vmem:[%s2460_s1 + $0x20] sm:$0xf]  ;;  %v1622_v54 = vld [vmem:[%s2460_s1 + $0x24] sm:$0xf0]  ;;  %s2470_s18 = smov (!%p246_p4, %s1760_s18), 1  ;;  %v1440_v57 = vor.u32 %v1634_v51, %v1439_v50  ;;  %vm459_vm0 = vcmask 523264  }
  0x19   : > { %v1621_v55 = vld [vmem:[%s2460_s1 + $0x24] sm:$0xf]  ;;  %v1393_v56 = vld [vmem:[%s2460_s1 + $0x28] sm:$0xf0]  ;;  %s1607_s14 = sshll.u32 %s2470_s18, 6  ;;  %v1392_v58 = vor.u32 %v1622_v54, %v1391_v53  ;;  %s1608_s23 = sshll.u32 %s2470_s18, 8 }
  0x1a   : > { %565 = vmatpush.bf16.msra.mxu3 %v1452_v38  ;;  %v1383_v59 = vld [vmem:[%s2460_s1 + $0x10] sm:$0xf]  ;;  %v1620_v60 = vld [vmem:[%s2460_s1 + $0x14] sm:$0xf0]  ;;  %s1954_s25 = scalar_lea.vmem %s2459_s0, %s1607_s14  ;;  %v1396_v61 = vor.u32 %v1621_v55, %v1393_v56  ;;  %v1619_v0 = vld [vmem:[%s2460_s1 + $0x14] sm:$0xf]  ;;  %s2384_s26 = scalar_lea.vmem %s2464_s5, %s1608_s23 }
  0x1b   : > { %475 = vmatpush.bf16.msra.mxu0 %v1408_v35  ;;  %v1609_v62 = vld [vmem:[%s1954_s25 + $0x4] sm:$0xf]  ;;  %v1345_v63 = vld [vmem:[%s1954_s25 + $0x8] sm:$0xf0]  ;;  %v1385_v1 = vld [vmem:[%s2460_s1 + $0x18] sm:$0xf0]  ;;  %v1384_v3 = vor.u32 %v1620_v60, %v1383_v59 }
  0x1c   : > { %533 = vmatpush.bf16.msra.mxu2 %v1412_v40  ;;  %507 = vmatpush.bf16.msra.mxu1 %v1448_v47  ;;  %v1348_v2 = vor.u32 %v1609_v62, %v1345_v63  ;;  %v1388_v4 = vor.u32 %v1619_v0, %v1385_v1  ;;  %v1375_v5 = vld [vmem:[%s2460_s1] sm:$0xf]  ;;  %v1618_v6 = vld [vmem:[%s2460_s1 + $0x4] sm:$0xf0]  ;;  %v1617_v7 = vld [vmem:[%s2460_s1 + $0x4] sm:$0xf] }
  0x1d   : > { %v1377_v8 = vld [vmem:[%s2460_s1 + $0x8] sm:$0xf0]  ;;  %v1376_v9 = vor.u32 %v1618_v6, %v1375_v5  ;;  %v1343_v10 = vld [vmem:[%s1954_s25] sm:$0xf]  ;;  %v1610_v11 = vld [vmem:[%s1954_s25 + $0x4] sm:$0xf0] }
  0x1e   : > { %566 = vmatpush.bf16.msra.mxu3 %v1444_v49  ;;  %v1380_v12 = vor.u32 %v1617_v7, %v1377_v8  ;;  %v1344_v13 = vor.u32 %v1610_v11, %v1343_v10  ;;  %v1611_v14 = vld [vmem:[%s1954_s25 + $0x14] sm:$0xf]  ;;  %v1353_v15 = vld [vmem:[%s1954_s25 + $0x18] sm:$0xf0]  ;;  %v1351_v17 = vld [vmem:[%s1954_s25 + $0x10] sm:$0xf] }
  0x1f   : > { %476 = vmatpush.bf16.msra.mxu0 %v1400_v48  ;;  %v1356_v16 = vor.u32 %v1611_v14, %v1353_v15  ;;  %v1612_v18 = vld [vmem:[%s1954_s25 + $0x14] sm:$0xf0]  ;;  %v1613_v20 = vld [vmem:[%s1954_s25 + $0x24] sm:$0xf]  ;;  %v1361_v21 = vld [vmem:[%s1954_s25 + $0x28] sm:$0xf0] }
  0x20   : > { %534 = vmatpush.bf16.msra.mxu2 %v1404_v52  ;;  %508 = vmatpush.bf16.msra.mxu1 %v1440_v57  ;;  %v1352_v19 = vor.u32 %v1612_v18, %v1351_v17  ;;  %v1364_v22 = vor.u32 %v1613_v20, %v1361_v21  ;;  %v1359_v23 = vld [vmem:[%s1954_s25 + $0x20] sm:$0xf]  ;;  %v1614_v24 = vld [vmem:[%s1954_s25 + $0x24] sm:$0xf0]  ;;  %v1615_v26 = vld [vmem:[%s1954_s25 + $0x34] sm:$0xf] }
  0x21   : > { %1473 = vmatmul.msk.bf16.vlgmr.msra.gmra.mxu3 %vm459_vm0, %v1348_v2  ;;  %v1360_v25 = vor.u32 %v1614_v24, %v1359_v23  ;;  %v1369_v27 = vld [vmem:[%s1954_s25 + $0x38] sm:$0xf0]  ;;  %v1367_v29 = vld [vmem:[%s1954_s25 + $0x30] sm:$0xf]  ;;  %v1616_v30 = vld [vmem:[%s1954_s25 + $0x34] sm:$0xf0] }
  0x22   : > { %v1372_v28 = vor.u32 %v1615_v26, %v1369_v27  ;;  %v1368_v31 = vor.u32 %v1616_v30, %v1367_v29  ;;  %v297_v34 = vld [vmem:[%s2461_s2] sm:$0x3] }
  0x23   : > { %477 = vmatpush.bf16.msra.mxu0 %v1392_v58  ;;  %1469 = vmatmul.msk.bf16.vlgmr.msra.gmra.mxu1 %vm459_vm0, %v1348_v2  ;;  %v2001_v35 = vperm.slane %v297_v34, 0  ;;  %v2004_v38 = vperm.slane %v297_v34, 1 }
  0x24   : > { %535 = vmatpush.bf16.msra.mxu2 %v1396_v61 }
  0x27   : > { %478 = vmatpush.bf16.msra.mxu0 %v1384_v3 }
  0x28   : > { %536 = vmatpush.bf16.msra.mxu2 %v1388_v4 }
  0x2b   : > { %479 = vmatpush.bf16.msra.mxu0 %v1376_v9 }
  0x2c   : > { %537 = vmatpush.bf16.msra.mxu2 %v1380_v12 }
  0x2e   : > { %480 = vmatmul.bf16.vlgmr.msra.gmra.mxu0 %v1344_v13 }
  0x2f   : > { %538 = vmatmul.bf16.vlgmr.msra.gmra.mxu2 %v1344_v13 }
  0x31   : > { %1474 = vmatmul.msk.bf16.gmra.mxu3 %vm459_vm0, %v1356_v16 }
  0x33   : > { %1470 = vmatmul.msk.bf16.gmra.mxu1 %vm459_vm0, %v1356_v16 }
  0x3e   : > { %485 = vmatmul.bf16.gmra.mxu0 %v1352_v19 }
  0x3f   : > { %543 = vmatmul.bf16.gmra.mxu2 %v1352_v19 }
  0x41   : > { %1475 = vmatmul.msk.bf16.gmra.mxu3 %vm459_vm0, %v1364_v22 }
  0x43   : > { %1471 = vmatmul.msk.bf16.gmra.mxu1 %vm459_vm0, %v1364_v22 }
  0x4e   : > { %490 = vmatmul.bf16.gmra.mxu0 %v1360_v25 }
  0x4f   : > { %548 = vmatmul.bf16.gmra.mxu2 %v1360_v25 }
  0x51   : > { %1476 = vmatmul.msk.bf16.gmra.mxu3 %vm459_vm0, %v1372_v28 }
  0x53   : > { %1472 = vmatmul.msk.bf16.gmra.mxu1 %vm459_vm0, %v1372_v28 }
  0x5e   : > { %495 = vmatmul.bf16.gmra.mxu0 %v1368_v31 }
  0x5f   : > { %553 = vmatmul.bf16.gmra.mxu2 %v1368_v31 }
  0xa0   : > { %v510_v32 = vpop.f32.mrf.mxu1 }
  0xa4   : > { %v568_v33 = vpop.f32.mrf.mxu3 }
  0xa8   : > { %v512_v39 = vpop.f32.mrf.mxu1 }
  0xab   : > { %v481_v36 = vpop.f32.mrf.mxu0 }
  0xac   : > { %v482_v37 = vadd.f32 %v481_v36, %v2001_v35  ;;  %v570_v40 = vpop.f32.mrf.mxu3 }
  0xae   : > { %v2006_v42 = vadd.f32 %v510_v32, %v482_v37 }
  0xb0   : > { %v515_v48 = vpop.f32.mrf.mxu1 }
  0xb2   : > { %v539_v41 = vpop.f32.mrf.mxu2 }
  0xb3   : > { %v540_v43 = vadd.f32 %v539_v41, %v2004_v38  ;;  %v483_v44 = vpop.f32.mrf.mxu0 }
  0xb4   : > { %v484_v47 = vadd.f32 %v483_v44, %v2001_v35  ;;  %v573_v50 = vpop.f32.mrf.mxu3 }
  0xb5   : > { %v2009_v45 = vadd.f32 %v568_v33, %v540_v43 }
  0xb6   : > { %v2015_v53 = vadd.f32 %v512_v39, %v484_v47 }
  0xb7   : > { %v588_v46 = vmax.f32 %v2006_v42, %v2009_v45 }
  0xb8   : > { %v517_v61 = vpop.f32.mrf.mxu1 }
  0xb9   : > { %589 = vmax.xlane.f32.xlu0 %v588_v46 }
  0xba   : > { %v541_v49 = vpop.f32.mrf.mxu2 }
  0xbb   : > { %v542_v51 = vadd.f32 %v541_v49, %v2004_v38  ;;  %v486_v52 = vpop.f32.mrf.mxu0 }
  0xbc   : > { %v487_v55 = vadd.f32 %v486_v52, %v2001_v35  ;;  %v575_v62 = vpop.f32.mrf.mxu3 }
  0xbd   : > { %v2017_v54 = vadd.f32 %v570_v40, %v542_v51 }
  0xbe   : > { %v2022_v58 = vadd.f32 %v515_v48, %v487_v55 }
  0xbf   : > { %v591_v56 = vmax.f32 %v2015_v53, %v2017_v54 }
  0xc0   : > { %v520_v7 = vpop.f32.mrf.mxu1 }
  0xc1   : > { %592 = vmax.xlane.f32.xlu0 %v591_v56 }
  0xc2   : > { %v544_v57 = vpop.f32.mrf.mxu2 }
  0xc3   : > { %v545_v59 = vadd.f32 %v544_v57, %v2004_v38  ;;  %v488_v60 = vpop.f32.mrf.mxu0 }
  0xc4   : > { %v489_v1 = vadd.f32 %v488_v60, %v2001_v35  ;;  %v578_v8 = vpop.f32.mrf.mxu3 }
  0xc5   : > { %v2025_v63 = vadd.f32 %v573_v50, %v545_v59 }
  0xc6   : > { %v2031_v5 = vadd.f32 %v517_v61, %v489_v1 }
  0xc7   : > { %v594_v0 = vmax.f32 %v2022_v58, %v2025_v63 }
  0xc8   : > { %v522_v16 = vpop.f32.mrf.mxu1 }
  0xc9   : > { %595 = vmax.xlane.f32.xlu1 %v594_v0 }
  0xca   : > { %v546_v2 = vpop.f32.mrf.mxu2 }
  0xcb   : > { %v547_v3 = vadd.f32 %v546_v2, %v2004_v38  ;;  %v491_v4 = vpop.f32.mrf.mxu0 }
  0xcc   : > { %v492_v9 = vadd.f32 %v491_v4, %v2001_v35  ;;  %v580_v18 = vpop.f32.mrf.mxu3 }
  0xcd   : > { %v2033_v6 = vadd.f32 %v575_v62, %v547_v3 }
  0xce   : > { %v2038_v12 = vadd.f32 %v520_v7, %v492_v9 }
  0xcf   : > { %v597_v10 = vmax.f32 %v2031_v5, %v2033_v6 }
  0xd0   : > { %v525_v27 = vpop.f32.mrf.mxu1 }
  0xd1   : > { %598 = vmax.xlane.f32.xlu1 %v597_v10 }
  0xd2   : > { %v549_v11 = vpop.f32.mrf.mxu2 }
  0xd3   : > { %v550_v13 = vadd.f32 %v549_v11, %v2004_v38  ;;  %v493_v14 = vpop.f32.mrf.mxu0 }
  0xd4   : > { %v494_v19 = vadd.f32 %v493_v14, %v2001_v35  ;;  %v583_v28 = vpop.f32.mrf.mxu3 }
  0xd5   : > { %v2041_v15 = vadd.f32 %v578_v8, %v550_v13 }
  0xd6   : > { %v2047_v23 = vadd.f32 %v522_v16, %v494_v19 }
  0xd7   : > { %v600_v17 = vmax.f32 %v2038_v12, %v2041_v15 }
  0xd8   : > { %v527_v40 = vpop.f32.mrf.mxu1 }
  0xd9   : > { %601 = vmax.xlane.f32.xlu2 %v600_v17 }
  0xda   : > { %v551_v20 = vpop.f32.mrf.mxu2 }
  0xdb   : > { %v552_v21 = vadd.f32 %v551_v20, %v2004_v38  ;;  %v496_v22 = vpop.f32.mrf.mxu0 }
  0xdc   : > { %v497_v25 = vadd.f32 %v496_v22, %v2001_v35  ;;  %v585_v41 = vpop.f32.mrf.mxu3 }
  0xdd   : > { %v2049_v24 = vadd.f32 %v580_v18, %v552_v21 }
  0xde   : > { %v2054_v30 = vadd.f32 %v525_v27, %v497_v25 }
  0xdf   : > { %v603_v26 = vmax.f32 %v2047_v23, %v2049_v24 }
  0xe1   : > { %604 = vmax.xlane.f32.xlu2 %v603_v26 }
  0xe2   : > { %v554_v29 = vpop.f32.mrf.mxu2 }
  0xe3   : > { %v555_v31 = vadd.f32 %v554_v29, %v2004_v38  ;;  %v498_v33 = vpop.f32.mrf.mxu0  ;;  %v1672_v29 = vld [vmem:[%s2462_s3 + $0xf4] sm:$0xf0] }
  0xe4   : > { %v499_v36 = vadd.f32 %v498_v33, %v2001_v35 }
  0xe5   : > { %v2057_v32 = vadd.f32 %v583_v28, %v555_v31  ;;  %v1599_v28 = vld [vmem:[%s2462_s3 + $0xf0] sm:$0xf] }
  0xe6   : > { %v2063_v43 = vadd.f32 %v527_v40, %v499_v36  ;;  %v1535_v31 = vld [vmem:[%s2462_s3 + $0x70] sm:$0xf]  ;;  %v1656_v36 = vld [vmem:[%s2462_s3 + $0x74] sm:$0xf0] }
  0xe7   : > { %v606_v34 = vmax.f32 %v2054_v30, %v2057_v32 }
  0xe9   : > { %607 = vmax.xlane.f32.xlu0 %v606_v34  ;;  %v1600_v34 = vor.u32 %v1672_v29, %v1599_v28  ;;  %v1667_v28 = vld [vmem:[%s2462_s3 + $0xd4] sm:$0xf]  ;;  %v1585_v29 = vld [vmem:[%s2462_s3 + $0xd8] sm:$0xf0] }
  0xea   : > { %v556_v37 = vpop.f32.mrf.mxu2 }
  0xeb   : > { %v557_v39 = vadd.f32 %v556_v37, %v2004_v38  ;;  %v1591_v37 = vld [vmem:[%s2462_s3 + $0xe0] sm:$0xf]  ;;  %1047 = vmatpush.bf16.msrb.mxu3 %v1600_v34  ;;  %v1588_v34 = vor.u32 %v1667_v28, %v1585_v29  ;;  %v1503_v28 = vld [vmem:[%s2462_s3 + $0x30] sm:$0xf]  ;;  %v1648_v29 = vld [vmem:[%s2462_s3 + $0x34] sm:$0xf0] }
  0xed   : > { %v2065_v44 = vadd.f32 %v585_v41, %v557_v39  ;;  %v1670_v39 = vld [vmem:[%s2462_s3 + $0xe4] sm:$0xf0] }
  0xef   : > { %v609_v46 = vmax.f32 %v2063_v43, %v2065_v44 }
  0xf1   : > { %610 = vmax.xlane.f32.xlu1 %v609_v46  ;;  %v1536_v46 = vor.u32 %v1656_v36, %v1535_v31  ;;  %v1511_v31 = vld [vmem:[%s2462_s3 + $0x40] sm:$0xf]  ;;  %v1650_v36 = vld [vmem:[%s2462_s3 + $0x44] sm:$0xf0] }
  0xf3   : > { %1018 = vmatpush.bf16.msrb.mxu1 %v1536_v46 }
 0x12c   : > { %v590_v47 = vpop.xlane.xlu0 %589 }
 0x12d   : > { %v612_v48 = vsub.f32 %v2006_v42, %v590_v47  ;;  %v613_v49 = vsub.f32 %v2009_v45, %v590_v47  ;;  %v1671_v47 = vld [vmem:[%s2462_s3 + $0xf4] sm:$0xf] }
 0x12f   : > { %v628_v35 = vmul.f32 1.442695, %v612_v48  ;;  %v630_v50 = vmul.f32 1.442695, %v613_v49  ;;  %v1601_v48 = vld [vmem:[%s2462_s3 + $0xf8] sm:$0xf0] }
 0x130   : > { %v1527_v49 = vld [vmem:[%s2462_s3 + $0x60] sm:$0xf] }
 0x131   : > { %1698 = vpow2.f32 %v628_v35  ;;  %v1592_v35 = vor.u32 %v1670_v39, %v1591_v37  ;;  %v1651_v37 = vld [vmem:[%s2462_s3 + $0x54] sm:$0xf]  ;;  %v1521_v39 = vld [vmem:[%s2462_s3 + $0x58] sm:$0xf0] }
 0x132   : > { %1700 = vpow2.f32 %v630_v50  ;;  %v1604_v50 = vor.u32 %v1671_v47, %v1601_v48  ;;  %v1524_v46 = vor.u32 %v1651_v37, %v1521_v39  ;;  %v1567_v48 = vld [vmem:[%s2462_s3 + $0xb0] sm:$0xf]  ;;  %v1505_v37 = vld [vmem:[%s2462_s3 + $0x38] sm:$0xf0]  ;;  %v1559_v39 = vld [vmem:[%s2462_s3 + $0xa0] sm:$0xf] }
 0x133   : > { %1048 = vmatpush.bf16.msrb.mxu3 %v1592_v35 }
 0x134   : > { %v593_v38 = vpop.xlane.xlu0 %592  ;;  %1105 = vmatpush.bf16.msrb.mxu2 %v1604_v50 }
 0x135   : > { %v614_v51 = vsub.f32 %v2015_v53, %v593_v38  ;;  %v615_v52 = vsub.f32 %v2017_v54, %v593_v38  ;;  %v1654_v38 = vld [vmem:[%s2462_s3 + $0x64] sm:$0xf0] }
 0x137   : > { %v2073_v55 = vpop.eup %1698  ;;  %v632_v56 = vmul.f32 1.442695, %v614_v51  ;;  %v634_v57 = vmul.f32 1.442695, %v615_v52  ;;  %v1655_v51 = vld [vmem:[%s2462_s3 + $0x74] sm:$0xf] }
 0x138   : > { %v2075_v59 = vpop.eup %1700  ;;  %v1537_v52 = vld [vmem:[%s2462_s3 + $0x78] sm:$0xf0] }
 0x139   : > { %1702 = vpow2.f32 %v632_v56  ;;  %v660_v60 = vadd.f32 %v2075_v59, %v2073_v55 }
 0x13a   : > { %1704 = vpow2.f32 %v634_v57 }
 0x13b   : > { %661 = vadd.xlane.f32.xlu2 %v660_v60 }
 0x13c   : > { %v596_v61 = vpop.xlane.xlu1 %595 }
 0x13d   : > { %v616_v62 = vsub.f32 %v2022_v58, %v596_v61  ;;  %v617_v0 = vsub.f32 %v2025_v63, %v596_v61  ;;  %v1528_v61 = vor.u32 %v1654_v38, %v1527_v49  ;;  %v1512_v38 = vor.u32 %v1650_v36, %v1511_v31  ;;  %v1663_v31 = vld [vmem:[%s2462_s3 + $0xb4] sm:$0xf] }
 0x13e   : > { %v1647_v36 = vld [vmem:[%s2462_s3 + $0x34] sm:$0xf] }
 0x13f   : > { %v2081_v1 = vpop.eup %1702  ;;  %v636_v2 = vmul.f32 1.442695, %v616_v62  ;;  %v638_v3 = vmul.f32 1.442695, %v617_v0  ;;  %v1540_v62 = vor.u32 %v1655_v51, %v1537_v52  ;;  %v1583_v0 = vld [vmem:[%s2462_s3 + $0xd0] sm:$0xf]  ;;  %1019 = vmatpush.bf16.msrb.mxu1 %v1528_v61 }
 0x140   : > { %v2083_v4 = vpop.eup %1704  ;;  %v1664_v51 = vld [vmem:[%s2462_s3 + $0xb4] sm:$0xf0] }
 0x141   : > { %1706 = vpow2.f32 %v636_v2  ;;  %v663_v7 = vadd.f32 %v2083_v4, %v2081_v1  ;;  %1076 = vmatpush.bf16.msrb.mxu0 %v1540_v62 }
 0x142   : > { %1708 = vpow2.f32 %v638_v3  ;;  %v1668_v3 = vld [vmem:[%s2462_s3 + $0xd4] sm:$0xf0] }
 0x143   : > { %664 = vadd.xlane.f32.xlu0 %v663_v7  ;;  %v1669_v7 = vld [vmem:[%s2462_s3 + $0xe4] sm:$0xf] }
 0x144   : > { %v599_v8 = vpop.xlane.xlu1 %598 }
 0x145   : > { %v618_v9 = vsub.f32 %v2031_v5, %v599_v8  ;;  %v619_v10 = vsub.f32 %v2033_v6, %v599_v8  ;;  %v1593_v8 = vld [vmem:[%s2462_s3 + $0xe8] sm:$0xf0] }
 0x147   : > { %v2089_v11 = vpop.eup %1706  ;;  %v640_v13 = vmul.f32 1.442695, %v618_v9  ;;  %v642_v14 = vmul.f32 1.442695, %v619_v10  ;;  %v1596_v10 = vor.u32 %v1669_v7, %v1593_v8 }
 0x148   : > { %v2091_v16 = vpop.eup %1708 }
 0x149   : > { %1710 = vpow2.f32 %v640_v13  ;;  %v666_v17 = vadd.f32 %v2091_v16, %v2089_v11  ;;  %v1519_v13 = vld [vmem:[%s2462_s3 + $0x50] sm:$0xf]  ;;  %1106 = vmatpush.bf16.msrb.mxu2 %v1596_v10 }
 0x14a   : > { %1712 = vpow2.f32 %v642_v14  ;;  %v1652_v14 = vld [vmem:[%s2462_s3 + $0x54] sm:$0xf0] }
 0x14b   : > { %667 = vadd.xlane.f32.xlu1 %v666_v17  ;;  %v1653_v17 = vld [vmem:[%s2462_s3 + $0x64] sm:$0xf] }
 0x14c   : > { %v602_v18 = vpop.xlane.xlu2 %601 }
 0x14d   : > { %v620_v19 = vsub.f32 %v2038_v12, %v602_v18  ;;  %v621_v20 = vsub.f32 %v2041_v15, %v602_v18  ;;  %v1584_v18 = vor.u32 %v1668_v3, %v1583_v0  ;;  %1107 = vmatpush.bf16.msrb.mxu2 %v1588_v34  ;;  %v1569_v34 = vld [vmem:[%s2462_s3 + $0xb8] sm:$0xf0] }
 0x14f   : > { %v2097_v21 = vpop.eup %1710  ;;  %v644_v22 = vmul.f32 1.442695, %v620_v19  ;;  %v646_v25 = vmul.f32 1.442695, %v621_v20  ;;  %v1529_v19 = vld [vmem:[%s2462_s3 + $0x68] sm:$0xf0]  ;;  %1049 = vmatpush.bf16.msrb.mxu3 %v1584_v18 }
 0x150   : > { %v2099_v26 = vpop.eup %1712  ;;  %v1575_v20 = vld [vmem:[%s2462_s3 + $0xc0] sm:$0xf]  ;;  %v1665_v18 = vld [vmem:[%s2462_s3 + $0xc4] sm:$0xf] }
 0x151   : > { %1714 = vpow2.f32 %v644_v22  ;;  %v669_v27 = vadd.f32 %v2099_v26, %v2097_v21  ;;  %v1666_v22 = vld [vmem:[%s2462_s3 + $0xc4] sm:$0xf0] }
 0x152   : > { %1716 = vpow2.f32 %v646_v25  ;;  %v1520_v25 = vor.u32 %v1652_v14, %v1519_v13  ;;  %v1576_v47 = vor.u32 %v1666_v22, %v1575_v20  ;;  %v1649_v20 = vld [vmem:[%s2462_s3 + $0x44] sm:$0xf] }
 0x153   : > { %670 = vadd.xlane.f32.xlu2 %v669_v27  ;;  %v1532_v27 = vor.u32 %v1653_v17, %v1529_v19  ;;  %v1577_v19 = vld [vmem:[%s2462_s3 + $0xc8] sm:$0xf0] }
 0x154   : > { %v605_v33 = vpop.xlane.xlu2 %604  ;;  %1020 = vmatpush.bf16.msrb.mxu1 %v1520_v25  ;;  %1050 = vmatpush.bf16.msrb.mxu3 %v1576_v47  ;;  %v1580_v22 = vor.u32 %v1665_v18, %v1577_v19  ;;  %v1513_v25 = vld [vmem:[%s2462_s3 + $0x48] sm:$0xf0]  ;;  %v1643_v18 = vld [vmem:[%s2462_s3 + $0x14] sm:$0xf]  ;;  %v1489_v19 = vld [vmem:[%s2462_s3 + $0x18] sm:$0xf0] }
 0x155   : > { %v622_v40 = vsub.f32 %v2047_v23, %v605_v33  ;;  %v623_v41 = vsub.f32 %v2049_v24, %v605_v33  ;;  %1077 = vmatpush.bf16.msrb.mxu0 %v1532_v27  ;;  %v1516_v27 = vor.u32 %v1649_v20, %v1513_v25  ;;  %v1659_v25 = vld [vmem:[%s2462_s3 + $0x94] sm:$0xf] }
 0x156   : > { %1108 = vmatpush.bf16.msrb.mxu2 %v1580_v22  ;;  %v1492_v22 = vor.u32 %v1643_v18, %v1489_v19 }
 0x157   : > { %v2141_v56 = vpop.eup %1714  ;;  %v648_v57 = vmul.f32 1.442695, %v622_v40  ;;  %v650_v60 = vmul.f32 1.442695, %v623_v41 }
 0x158   : > { %v2146_v2 = vpop.eup %1716  ;;  %1021 = vmatpush.bf16.msrb.mxu1 %v1512_v38 }
 0x159   : > { %1718 = vpow2.f32 %v648_v57  ;;  %v672_v9 = vadd.f32 %v2146_v2, %v2141_v56  ;;  %1078 = vmatpush.bf16.msrb.mxu0 %v1524_v46  ;;  %v1508_v46 = vor.u32 %v1647_v36, %v1505_v37  ;;  %v1642_v36 = vld [vmem:[%s2462_s3 + $0x4] sm:$0xf0]  ;;  %v1641_v37 = vld [vmem:[%s2462_s3 + $0x4] sm:$0xf] }
 0x15a   : > { %1720 = vpow2.f32 %v650_v60  ;;  %v1568_v60 = vor.u32 %v1664_v51, %v1567_v48  ;;  %v1495_v48 = vld [vmem:[%s2462_s3 + $0x20] sm:$0xf]  ;;  %v1561_v51 = vld [vmem:[%s2462_s3 + $0xa8] sm:$0xf0] }
 0x15b   : > { %673 = vadd.xlane.f32.xlu0 %v672_v9 }
 0x15c   : > { %v608_v33 = vpop.xlane.xlu0 %607  ;;  %1051 = vmatpush.bf16.msrb.mxu3 %v1568_v60  ;;  %v1497_v60 = vld [vmem:[%s2462_s3 + $0x28] sm:$0xf0] }
 0x15d   : > { %v624_v40 = vsub.f32 %v2054_v30, %v608_v33  ;;  %v625_v41 = vsub.f32 %v2057_v32, %v608_v33  ;;  %1079 = vmatpush.bf16.msrb.mxu0 %v1516_v27  ;;  %v1504_v33 = vor.u32 %v1648_v29, %v1503_v28  ;;  %v1553_v27 = vld [vmem:[%s2462_s3 + $0x98] sm:$0xf0]  ;;  %v1543_v29 = vld [vmem:[%s2462_s3 + $0x80] sm:$0xf] }
 0x15e   : > { %v1556_v28 = vor.u32 %v1659_v25, %v1553_v27 }
 0x15f   : > { %v2200_v49 = vpop.eup %1718  ;;  %v652_v35 = vmul.f32 1.442695, %v624_v40  ;;  %v654_v50 = vmul.f32 1.442695, %v625_v41  ;;  %v1662_v40 = vld [vmem:[%s2462_s3 + $0xa4] sm:$0xf0]  ;;  %v1572_v41 = vor.u32 %v1663_v31, %v1569_v34  ;;  %1022 = vmatpush.bf16.msrb.mxu1 %v1504_v33 }
 0x160   : > { %v2205_v52 = vpop.eup %1720  ;;  %v1560_v47 = vor.u32 %v1662_v40, %v1559_v39  ;;  %v1658_v31 = vld [vmem:[%s2462_s3 + $0x84] sm:$0xf0]  ;;  %v1479_v33 = vld [vmem:[%s2462_s3] sm:$0xf]  ;;  %v1481_v39 = vld [vmem:[%s2462_s3 + $0x8] sm:$0xf0] }
 0x161   : > { %1722 = vpow2.f32 %v652_v35  ;;  %v675_v57 = vadd.f32 %v2205_v52, %v2200_v49  ;;  %1109 = vmatpush.bf16.msrb.mxu2 %v1572_v41  ;;  %v1646_v35 = vld [vmem:[%s2462_s3 + $0x24] sm:$0xf0]  ;;  %1080 = vmatpush.bf16.msrb.mxu0 %v1508_v46  ;;  %v1544_v34 = vor.u32 %v1658_v31, %v1543_v29  ;;  %v1480_v40 = vor.u32 %v1642_v36, %v1479_v33  ;;  %v1657_v46 = vld [vmem:[%s2462_s3 + $0x84] sm:$0xf] }
 0x162   : > { %1724 = vpow2.f32 %v654_v50  ;;  %v1661_v50 = vld [vmem:[%s2462_s3 + $0xa4] sm:$0xf]  ;;  %1052 = vmatpush.bf16.msrb.mxu3 %v1560_v47  ;;  %v1496_v38 = vor.u32 %v1646_v35, %v1495_v48  ;;  %v1484_v41 = vor.u32 %v1641_v37, %v1481_v39  ;;  %v1545_v47 = vld [vmem:[%s2462_s3 + $0x88] sm:$0xf0] }
 0x163   : > { %676 = vadd.xlane.f32.xlu1 %v675_v57  ;;  %v1645_v57 = vld [vmem:[%s2462_s3 + $0x24] sm:$0xf]  ;;  %v1548_v48 = vor.u32 %v1657_v46, %v1545_v47 }
 0x164   : > { %v611_v61 = vpop.xlane.xlu1 %610  ;;  %1023 = vmatpush.bf16.msrb.mxu1 %v1496_v38 }
 0x165   : > { %v626_v62 = vsub.f32 %v2063_v43, %v611_v61  ;;  %v627_v0 = vsub.f32 %v2065_v44, %v611_v61  ;;  %v1564_v61 = vor.u32 %v1661_v50, %v1561_v51 }
 0x167   : > { %v2211_v3 = vpop.eup %1722  ;;  %v656_v7 = vmul.f32 1.442695, %v626_v62  ;;  %v658_v8 = vmul.f32 1.442695, %v627_v0  ;;  %v1500_v62 = vor.u32 %v1645_v57, %v1497_v60  ;;  %v1551_v0 = vld [vmem:[%s2462_s3 + $0x90] sm:$0xf]  ;;  %1110 = vmatpush.bf16.msrb.mxu2 %v1564_v61 }
 0x168   : > { %v2213_v9 = vpop.eup %1724 }
 0x169   : > { %1726 = vpow2.f32 %v656_v7  ;;  %v678_v10 = vadd.f32 %v2213_v9, %v2211_v3  ;;  %v1660_v7 = vld [vmem:[%s2462_s3 + $0x94] sm:$0xf0]  ;;  %1081 = vmatpush.bf16.msrb.mxu0 %v1500_v62 }
 0x16a   : > { %1728 = vpow2.f32 %v658_v8  ;;  %v1487_v8 = vld [vmem:[%s2462_s3 + $0x10] sm:$0xf] }
 0x16b   : > { %679 = vadd.xlane.f32.xlu2 %v678_v10  ;;  %v1552_v10 = vor.u32 %v1660_v7, %v1551_v0  ;;  %1111 = vmatpush.bf16.msrb.mxu2 %v1556_v28 }
 0x16d   : > { %1053 = vmatpush.bf16.msrb.mxu3 %v1552_v10  ;;  %1082 = vmatpush.bf16.msrb.mxu0 %v1492_v22 }
 0x16f   : > { %v2217_v13 = vpop.eup %1726  ;;  %1112 = vmatpush.bf16.msrb.mxu2 %v1548_v48 }
 0x170   : > { %v2219_v14 = vpop.eup %1728 }
 0x171   : > { %v681_v17 = vadd.f32 %v2219_v14, %v2217_v13  ;;  %1054 = vmatpush.bf16.msrb.mxu3 %v1544_v34  ;;  %1083 = vmatpush.bf16.msrb.mxu0 %v1484_v41 }
 0x173   : > { %682 = vadd.xlane.f32.xlu0 %v681_v17  ;;  %v1644_v17 = vld [vmem:[%s2462_s3 + $0x14] sm:$0xf0] }
 0x174   : > { %v1488_v20 = vor.u32 %v1644_v17, %v1487_v8 }
 0x176   : > { %1024 = vmatpush.bf16.msrb.mxu1 %v1488_v20 }
 0x17a   : > { %1025 = vmatpush.bf16.msrb.mxu1 %v1480_v40 }
 0x1ae   : > { %v662_v35 = vpop.xlane.xlu2 %661 }
 0x1af   : > { %1730 = vrcp.f32 %v662_v35  ;;  %v695_v0 = vand.u32 2147483648, %v662_v35  ;;  %vm689_vm2 = vweird.f32 %v662_v35  ;;  %v693_v10 = vand.u32 2147483647, %v662_v35 }
 0x1b1   : > { %v696_v20 = vor.u32 1.1754944e-38, %v695_v0  ;;  %vm694_vm5 = vcmp.eq.f32.partialorder %v693_v10, 8.507059e+37 }
 0x1b5   : > { %v1731_v50 = vpop.eup %1730 }
 0x1b6   : > { %v685_v38 = vmul.f32 %v1731_v50, %v662_v35  ;;  %v665_v51 = vpop.xlane.xlu0 %664  ;;  %vm690_vm1 = vweird.f32 %v1731_v50 }
 0x1b7   : > { %1732 = vrcp.f32 %v665_v51  ;;  %vm691_vm3 = vmor %vm689_vm2, %vm690_vm1  ;;  %v709_v18 = vand.u32 2147483648, %v665_v51  ;;  %v707_v25 = vand.u32 2147483647, %v665_v51  ;;  %vm703_vm6 = vweird.f32 %v665_v51 }
 0x1b8   : > { %v686_v57 = vsub.f32 1.0, %v685_v38 }
 0x1b9   : > { %v710_v31 = vor.u32 1.1754944e-38, %v709_v18  ;;  %vm708_vm8 = vcmp.eq.f32.partialorder %v707_v25, 8.507059e+37 }
 0x1ba   : > { %v687_v60 = vmul.f32 %v1731_v50, %v686_v57 }
 0x1bc   : > { %v688_v62 = vadd.f32 %v1731_v50, %v687_v60 }
 0x1bd   : > { %v1733_v61 = vpop.eup %1732 }
 0x1be   : > { %v699_v7 = vmul.f32 %v1733_v61, %v665_v51  ;;  %v668_v8 = vpop.xlane.xlu1 %667  ;;  %v692_v19 = vsel %vm691_vm3, %v1731_v50, %v688_v62  ;;  %vm704_vm4 = vweird.f32 %v1733_v61 }
 0x1bf   : > { %1734 = vrcp.f32 %v668_v8  ;;  %v697_v28 = vsel %vm694_vm5, %v696_v20, %v692_v19  ;;  %vm705_vm7 = vmor %vm703_vm6, %vm704_vm4  ;;  %v723_v57 = vand.u32 2147483648, %v668_v8  ;;  %vm717_vm10 = vweird.f32 %v668_v8 }
 0x1c0   : > { %v700_v17 = vsub.f32 1.0, %v699_v7  ;;  %v796_v39 = vmul.f32 %v2073_v55, %v697_v28  ;;  %v797_v46 = vmul.f32 %v2075_v59, %v697_v28 }
 0x1c1   : > { %v724_v0 = vor.u32 1.1754944e-38, %v723_v57 }
 0x1c2   : > { %v701_v22 = vmul.f32 %v1733_v61, %v700_v17 }
 0x1c4   : > { %v702_v27 = vadd.f32 %v1733_v61, %v701_v22 }
 0x1c5   : > { %v1735_v29 = vpop.eup %1734 }
 0x1c6   : > { %v713_v33 = vmul.f32 %v1735_v29, %v668_v8  ;;  %v671_v34 = vpop.xlane.xlu2 %670  ;;  %v706_v36 = vsel %vm705_vm7, %v1733_v61, %v702_v27  ;;  %vm718_vm9 = vweird.f32 %v1735_v29 }
 0x1c7   : > { %1736 = vrcp.f32 %v671_v34  ;;  %v711_v37 = vsel %vm708_vm8, %v710_v31, %v706_v36  ;;  %vm719_vm11 = vmor %vm717_vm10, %vm718_vm9  ;;  %v737_v59 = vand.u32 2147483648, %v671_v34  ;;  %v735_v7 = vand.u32 2147483647, %v671_v34 }
 0x1c8   : > { %v714_v40 = vsub.f32 1.0, %v713_v33  ;;  %v798_v41 = vmul.f32 %v2081_v1, %v711_v37  ;;  %v799_v47 = vmul.f32 %v2083_v4, %v711_v37  ;;  %v721_v1 = vand.u32 2147483647, %v668_v8 }
 0x1c9   : > { %vm731_vm14 = vweird.f32 %v671_v34  ;;  %v738_v19 = vor.u32 1.1754944e-38, %v737_v59  ;;  %vm736_vm1 = vcmp.eq.f32.partialorder %v735_v7, 8.507059e+37 }
 0x1ca   : > { %v715_v48 = vmul.f32 %v1735_v29, %v714_v40  ;;  %v812_v35 = vpack.c.bf16 %v798_v41, %v796_v39  ;;  %v813_v50 = vpack.c.bf16 %v799_v47, %v797_v46  ;;  %vm722_vm13 = vcmp.eq.f32.partialorder %v721_v1, 8.507059e+37 }
 0x1cc   : > { %1026 = vmatmul.bf16.vlgmr.msrb.gmra.mxu1 %v812_v35  ;;  %1055 = vmatmul.bf16.vlgmr.msrb.gmra.mxu3 %v813_v50  ;;  %v716_v51 = vadd.f32 %v1735_v29, %v715_v48 }
 0x1cd   : > { %v1737_v38 = vpop.eup %1736  ;;  %1084 = vmatmul.bf16.vlgmr.msrb.gmra.mxu0 %v812_v35  ;;  %1113 = vmatmul.bf16.vlgmr.msrb.gmra.mxu2 %v813_v50 }
 0x1ce   : > { %v727_v60 = vmul.f32 %v1737_v38, %v671_v34  ;;  %v674_v55 = vpop.xlane.xlu0 %673  ;;  %v720_v4 = vsel %vm719_vm11, %v1735_v29, %v716_v51  ;;  %vm732_vm12 = vweird.f32 %v1737_v38 }
 0x1cf   : > { %1738 = vrcp.f32 %v674_v55  ;;  %v725_v10 = vsel %vm722_vm13, %v724_v0, %v720_v4  ;;  %vm733_vm15 = vmor %vm731_vm14, %vm732_vm12  ;;  %vm745_vm3 = vweird.f32 %v674_v55 }
 0x1d0   : > { %v728_v61 = vsub.f32 1.0, %v727_v60  ;;  %v800_v27 = vmul.f32 %v2089_v11, %v725_v10  ;;  %v801_v31 = vmul.f32 %v2091_v16, %v725_v10  ;;  %v751_v11 = vand.u32 2147483648, %v674_v55 }
 0x1d2   : > { %v729_v62 = vmul.f32 %v1737_v38, %v728_v61  ;;  %v752_v50 = vor.u32 1.1754944e-38, %v751_v11 }
 0x1d4   : > { %v730_v17 = vadd.f32 %v1737_v38, %v729_v62 }
 0x1d5   : > { %v1739_v18 = vpop.eup %1738 }
 0x1d6   : > { %v741_v20 = vmul.f32 %v1739_v18, %v674_v55  ;;  %v677_v22 = vpop.xlane.xlu1 %676  ;;  %v734_v25 = vsel %vm733_vm15, %v1737_v38, %v730_v17  ;;  %vm746_vm2 = vweird.f32 %v1739_v18 }
 0x1d7   : > { %1740 = vrcp.f32 %v677_v22  ;;  %v739_v8 = vsel %vm736_vm1, %v738_v19, %v734_v25  ;;  %v765_v48 = vand.u32 2147483648, %v677_v22  ;;  %vm747_vm4 = vmor %vm745_vm3, %vm746_vm2  ;;  %v763_v35 = vand.u32 2147483647, %v677_v22 }
 0x1d8   : > { %v742_v28 = vsub.f32 1.0, %v741_v20  ;;  %v802_v29 = vmul.f32 %v2097_v21, %v739_v8  ;;  %v803_v33 = vmul.f32 %v2099_v26, %v739_v8  ;;  %v749_v21 = vand.u32 2147483647, %v674_v55 }
 0x1d9   : > { %vm759_vm6 = vweird.f32 %v677_v22  ;;  %v766_v59 = vor.u32 1.1754944e-38, %v765_v48  ;;  %vm764_vm9 = vcmp.eq.f32.partialorder %v763_v35, 8.507059e+37 }
 0x1da   : > { %v814_v34 = vpack.c.bf16 %v802_v29, %v800_v27  ;;  %v815_v36 = vpack.c.bf16 %v803_v33, %v801_v31  ;;  %v743_v37 = vmul.f32 %v1739_v18, %v742_v28  ;;  %vm750_vm7 = vcmp.eq.f32.partialorder %v749_v21, 8.507059e+37  ;;  %v852_v21 = vld [vmem:[%s2463_s4] sm:$0x3] }
 0x1db   : > { %v2344_v48 = vperm.slane %v852_v21, 0 }
 0x1dc   : > { %1031 = vmatmul.bf16.gmra.mxu1 %v814_v34  ;;  %1060 = vmatmul.bf16.gmra.mxu3 %v815_v36  ;;  %v744_v46 = vadd.f32 %v1739_v18, %v743_v37 }
 0x1dd   : > { %v1741_v39 = vpop.eup %1740  ;;  %1089 = vmatmul.bf16.gmra.mxu0 %v814_v34  ;;  %1118 = vmatmul.bf16.gmra.mxu2 %v815_v36 }
 0x1de   : > { %v755_v40 = vmul.f32 %v1741_v39, %v677_v22  ;;  %v680_v41 = vpop.xlane.xlu2 %679  ;;  %vm760_vm5 = vweird.f32 %v1741_v39  ;;  %v748_v26 = vsel %vm747_vm4, %v1739_v18, %v744_v46 }
 0x1df   : > { %1742 = vrcp.f32 %v680_v41  ;;  %vm761_vm8 = vmor %vm759_vm6, %vm760_vm5  ;;  %v753_v1 = vsel %vm750_vm7, %v752_v50, %v748_v26  ;;  %v779_v8 = vand.u32 2147483648, %v680_v41  ;;  %vm773_vm11 = vweird.f32 %v680_v41 }
 0x1e0   : > { %v756_v47 = vsub.f32 1.0, %v755_v40  ;;  %v804_v62 = vmul.f32 %v2141_v56, %v753_v1  ;;  %v805_v7 = vmul.f32 %v2146_v2, %v753_v1  ;;  %v777_v27 = vand.u32 2147483647, %v680_v41 }
 0x1e1   : > { %v780_v29 = vor.u32 1.1754944e-38, %v779_v8  ;;  %v2346_v26 = vperm.slane %v852_v21, 1 }
 0x1e2   : > { %v757_v16 = vmul.f32 %v1741_v39, %v756_v47  ;;  %vm778_vm15 = vcmp.eq.f32.partialorder %v777_v27, 8.507059e+37 }
 0x1e4   : > { %v758_v38 = vadd.f32 %v1741_v39, %v757_v16 }
 0x1e5   : > { %v1743_v51 = vpop.eup %1742 }
 0x1e6   : > { %v769_v57 = vmul.f32 %v1743_v51, %v680_v41  ;;  %v683_v60 = vpop.xlane.xlu0 %682  ;;  %v762_v61 = vsel %vm761_vm8, %v1741_v39, %v758_v38  ;;  %vm774_vm10 = vweird.f32 %v1743_v51 }
 0x1e7   : > { %1744 = vrcp.f32 %v683_v60  ;;  %v767_v4 = vsel %vm764_vm9, %v766_v59, %v762_v61  ;;  %vm775_vm12 = vmor %vm773_vm11, %vm774_vm10  ;;  %vm787_vm14 = vweird.f32 %v683_v60 }
 0x1e8   : > { %v770_v55 = vsub.f32 1.0, %v769_v57  ;;  %v806_v0 = vmul.f32 %v2200_v49, %v767_v4  ;;  %v807_v10 = vmul.f32 %v2205_v52, %v767_v4  ;;  %v793_v49 = vand.u32 2147483648, %v683_v60 }
 0x1e9   : > { %v791_v52 = vand.u32 2147483647, %v683_v60 }
 0x1ea   : > { %v771_v17 = vmul.f32 %v1743_v51, %v770_v55  ;;  %v816_v18 = vpack.c.bf16 %v806_v0, %v804_v62  ;;  %v817_v19 = vpack.c.bf16 %v807_v10, %v805_v7  ;;  %v794_v33 = vor.u32 1.1754944e-38, %v793_v49 }
 0x1eb   : > { %vm792_vm2 = vcmp.eq.f32.partialorder %v791_v52, 8.507059e+37 }
 0x1ec   : > { %1036 = vmatmul.bf16.gmra.mxu1 %v816_v18  ;;  %1065 = vmatmul.bf16.gmra.mxu3 %v817_v19  ;;  %v772_v25 = vadd.f32 %v1743_v51, %v771_v17 }
 0x1ed   : > { %v1745_v20 = vpop.eup %1744  ;;  %1094 = vmatmul.bf16.gmra.mxu0 %v816_v18  ;;  %1123 = vmatmul.bf16.gmra.mxu2 %v817_v19 }
 0x1ee   : > { %v783_v22 = vmul.f32 %v1745_v20, %v683_v60  ;;  %vm788_vm13 = vweird.f32 %v1745_v20  ;;  %v776_v28 = vsel %vm775_vm12, %v1743_v51, %v772_v25 }
 0x1ef   : > { %vm789_vm1 = vmor %vm787_vm14, %vm788_vm13  ;;  %v781_v34 = vsel %vm778_vm15, %v780_v29, %v776_v28 }
 0x1f0   : > { %v784_v56 = vsub.f32 1.0, %v783_v22  ;;  %v808_v39 = vmul.f32 %v2211_v3, %v781_v34  ;;  %v809_v41 = vmul.f32 %v2213_v9, %v781_v34 }
 0x1f2   : > { %v785_v2 = vmul.f32 %v1745_v20, %v784_v56 }
 0x1f4   : > { %v786_v31 = vadd.f32 %v1745_v20, %v785_v2 }
 0x1f6   : > { %v790_v36 = vsel %vm789_vm1, %v1745_v20, %v786_v31 }
 0x1f7   : > { %v795_v37 = vsel %vm792_vm2, %v794_v33, %v790_v36 }
 0x1f8   : > { %v810_v40 = vmul.f32 %v2217_v13, %v795_v37  ;;  %v811_v46 = vmul.f32 %v2219_v14, %v795_v37 }
 0x1fa   : > { %v818_v11 = vpack.c.bf16 %v810_v40, %v808_v39  ;;  %v819_v47 = vpack.c.bf16 %v811_v46, %v809_v41 }
 0x1fc   : > { %1041 = vmatmul.bf16.gmra.mxu1 %v818_v11  ;;  %1070 = vmatmul.bf16.gmra.mxu3 %v819_v47 }
 0x1fd   : > { %1099 = vmatmul.bf16.gmra.mxu0 %v818_v11  ;;  %1128 = vmatmul.bf16.gmra.mxu2 %v819_v47 }
 0x249   : > { %v1027_v16 = vpop.f32.mrf.mxu1 }
 0x24a   : > { %v1085_v3 = vpop.f32.mrf.mxu0  ;;  %v1028_v9 = vadd.f32 %v1027_v16, %v2344_v48 }
 0x24b   : > { %v1086_v13 = vadd.f32 %v1085_v3, %v2346_v26 }
 0x24f   : > { %v1056_v14 = vpop.f32.mrf.mxu3 }
 0x250   : > { %v1057_v35 = vadd.f32 %v1056_v14, %v1028_v9  ;;  %v1114_v50 = vpop.f32.mrf.mxu2 }
 0x251   : > { %v1115_v38 = vadd.f32 %v1114_v50, %v1086_v13  ;;  %v1029_v51 = vpop.f32.mrf.mxu1 }
 0x252   : > { %v1087_v57 = vpop.f32.mrf.mxu0  ;;  %v1134_v60 = vmul.f32 %v1057_v35, %v2006_v42  ;;  %v1030_v61 = vadd.f32 %v1029_v51, %v2344_v48 }
 0x253   : > { %v1135_v1 = vmul.f32 %v1115_v38, %v2009_v45  ;;  %v1088_v59 = vadd.f32 %v1087_v57, %v2346_v26 }
 0x254   : > { %1150 = vxpose.xlu1.b32.start [1/8] (short) %v1134_v60, 128 }
 0x255   : > { %1182 = vxpose.xlu2.b32.start [1/8] (short) %v1135_v1, 128 }
 0x257   : > { %v1058_v55 = vpop.f32.mrf.mxu3 }
 0x258   : > { %v1059_v4 = vadd.f32 %v1058_v55, %v1030_v61  ;;  %v1116_v62 = vpop.f32.mrf.mxu2 }
 0x259   : > { %v1117_v0 = vadd.f32 %v1116_v62, %v1088_v59  ;;  %v1032_v7 = vpop.f32.mrf.mxu1 }
 0x25a   : > { %v1136_v10 = vmul.f32 %v1059_v4, %v2015_v53  ;;  %v1090_v17 = vpop.f32.mrf.mxu0  ;;  %v1033_v42 = vadd.f32 %v1032_v7, %v2344_v48 }
 0x25b   : > { %v1137_v18 = vmul.f32 %v1117_v0, %v2017_v54  ;;  %v1091_v45 = vadd.f32 %v1090_v17, %v2346_v26 }
 0x25c   : > { %1151 = vxpose.xlu1.b32.cont [2/8] (short) %v1136_v10, 128 }
 0x25d   : > { %1183 = vxpose.xlu2.b32.cont [2/8] (short) %v1137_v18, 128 }
 0x25f   : > { %v1061_v19 = vpop.f32.mrf.mxu3 }
 0x260   : > { %v1062_v20 = vadd.f32 %v1061_v19, %v1033_v42  ;;  %v1119_v22 = vpop.f32.mrf.mxu2 }
 0x261   : > { %v1120_v25 = vadd.f32 %v1119_v22, %v1091_v45  ;;  %v1034_v8 = vpop.f32.mrf.mxu1 }
 0x262   : > { %v1138_v56 = vmul.f32 %v1062_v20, %v2022_v58  ;;  %v1092_v27 = vpop.f32.mrf.mxu0  ;;  %v1035_v53 = vadd.f32 %v1034_v8, %v2344_v48 }
 0x263   : > { %v1139_v49 = vmul.f32 %v1120_v25, %v2025_v63  ;;  %v1093_v54 = vadd.f32 %v1092_v27, %v2346_v26 }
 0x264   : > { %1152 = vxpose.xlu1.b32.cont [3/8] (short) %v1138_v56, 128 }
 0x265   : > { %1184 = vxpose.xlu2.b32.cont [3/8] (short) %v1139_v49, 128 }
 0x267   : > { %v1063_v2 = vpop.f32.mrf.mxu3 }
 0x268   : > { %v1064_v52 = vadd.f32 %v1063_v2, %v1035_v53  ;;  %v1121_v28 = vpop.f32.mrf.mxu2 }
 0x269   : > { %v1122_v29 = vadd.f32 %v1121_v28, %v1093_v54  ;;  %v1037_v33 = vpop.f32.mrf.mxu1 }
 0x26a   : > { %v1140_v31 = vmul.f32 %v1064_v52, %v2031_v5  ;;  %v1095_v36 = vpop.f32.mrf.mxu0  ;;  %v1038_v58 = vadd.f32 %v1037_v33, %v2344_v48 }
 0x26b   : > { %v1141_v34 = vmul.f32 %v1122_v29, %v2033_v6  ;;  %v1096_v63 = vadd.f32 %v1095_v36, %v2346_v26 }
 0x26c   : > { %1153 = vxpose.xlu1.b32.cont [4/8] (short) %v1140_v31, 128 }
 0x26d   : > { %1185 = vxpose.xlu2.b32.cont [4/8] (short) %v1141_v34, 128 }
 0x26f   : > { %v1066_v37 = vpop.f32.mrf.mxu3 }
 0x270   : > { %v1067_v39 = vadd.f32 %v1066_v37, %v1038_v58  ;;  %v1124_v40 = vpop.f32.mrf.mxu2 }
 0x271   : > { %v1125_v41 = vadd.f32 %v1124_v40, %v1096_v63  ;;  %v1039_v46 = vpop.f32.mrf.mxu1 }
 0x272   : > { %v1142_v11 = vmul.f32 %v1067_v39, %v2038_v12  ;;  %v1097_v47 = vpop.f32.mrf.mxu0  ;;  %v1040_v6 = vadd.f32 %v1039_v46, %v2344_v48 }
 0x273   : > { %v1143_v5 = vmul.f32 %v1125_v41, %v2041_v15  ;;  %v1098_v21 = vadd.f32 %v1097_v47, %v2346_v26 }
 0x274   : > { %1154 = vxpose.xlu1.b32.cont [5/8] (short) %v1142_v11, 128 }
 0x275   : > { %1186 = vxpose.xlu2.b32.cont [5/8] (short) %v1143_v5, 128 }
 0x277   : > { %v1068_v16 = vpop.f32.mrf.mxu3 }
 0x278   : > { %v1069_v3 = vadd.f32 %v1068_v16, %v1040_v6  ;;  %v1126_v9 = vpop.f32.mrf.mxu2 }
 0x279   : > { %v1127_v13 = vadd.f32 %v1126_v9, %v1098_v21  ;;  %v1042_v14 = vpop.f32.mrf.mxu1 }
 0x27a   : > { %v1144_v35 = vmul.f32 %v1069_v3, %v2047_v23  ;;  %v1100_v50 = vpop.f32.mrf.mxu0  ;;  %v1043_v12 = vadd.f32 %v1042_v14, %v2344_v48 }
 0x27b   : > { %v1145_v38 = vmul.f32 %v1127_v13, %v2049_v24  ;;  %v1101_v15 = vadd.f32 %v1100_v50, %v2346_v26 }
 0x27c   : > { %1155 = vxpose.xlu1.b32.cont [6/8] (short) %v1144_v35, 128 }
 0x27d   : > { %1187 = vxpose.xlu2.b32.cont [6/8] (short) %v1145_v38, 128 }
 0x27f   : > { %v1071_v51 = vpop.f32.mrf.mxu3 }
 0x280   : > { %v1072_v57 = vadd.f32 %v1071_v51, %v1043_v12  ;;  %v1129_v60 = vpop.f32.mrf.mxu2 }
 0x281   : > { %v1130_v1 = vadd.f32 %v1129_v60, %v1101_v15  ;;  %v1044_v55 = vpop.f32.mrf.mxu1 }
 0x282   : > { %v1146_v61 = vmul.f32 %v1072_v57, %v2054_v30  ;;  %v1102_v23 = vpop.f32.mrf.mxu0  ;;  %v1045_v24 = vadd.f32 %v1044_v55, %v2344_v48 }
 0x283   : > { %v1147_v59 = vmul.f32 %v1130_v1, %v2057_v32  ;;  %v1103_v4 = vadd.f32 %v1102_v23, %v2346_v26 }
 0x284   : > { %1156 = vxpose.xlu1.b32.cont [7/8] (short) %v1146_v61, 128 }
 0x285   : > { %1188 = vxpose.xlu2.b32.cont [7/8] (short) %v1147_v59, 128 }
 0x287   : > { %v1073_v62 = vpop.f32.mrf.mxu3 }
 0x288   : > { %v1074_v0 = vadd.f32 %v1073_v62, %v1045_v24  ;;  %v1131_v7 = vpop.f32.mrf.mxu2 }
 0x289   : > { %v1132_v10 = vadd.f32 %v1131_v7, %v1103_v4 }
 0x28a   : > { %v1148_v17 = vmul.f32 %v1074_v0, %v2063_v43 }
 0x28b   : > { %v1149_v18 = vmul.f32 %v1132_v10, %v2065_v44 }
 0x28c   : > { %1157 = vxpose.xlu1.b32.end [8/8] (short) %v1148_v17, 128 }
 0x28d   : > { %1189 = vxpose.xlu2.b32.end [8/8] (short) %v1149_v18, 128 }
 0x2ee   : > { %v1198_v30 = vpop.trf.xlu2 }
 0x2ef   : > { %1230 = vst.msk [vmem:[%s2384_s26 + $0x80] sm:$0xff] %vm459_vm0, %v1198_v30 }
 0x2f6   : > { %v1199_v32 = vpop.trf.xlu2 }
 0x2f7   : > { %1231 = vst.msk [vmem:[%s2384_s26 + $0x88] sm:$0xff] %vm459_vm0, %v1199_v32 }
 0x2f8   : > { %v1166_v43 = vpop.trf.xlu1 }
 0x2f9   : > { %1214 = vst.msk [vmem:[%s2384_s26] sm:$0xff] %vm459_vm0, %v1166_v43 }
 0x2fe   : > { %v1200_v44 = vpop.trf.xlu2 }
 0x2ff   : > { %1232 = vst.msk [vmem:[%s2384_s26 + $0x90] sm:$0xff] %vm459_vm0, %v1200_v44 }
 0x300   : > { %v1167_v48 = vpop.trf.xlu1 }
 0x301   : > { %1215 = vst.msk [vmem:[%s2384_s26 + $0x8] sm:$0xff] %vm459_vm0, %v1167_v48 }
 0x306   : > { %v1201_v26 = vpop.trf.xlu2 }
 0x307   : > { %1233 = vst.msk [vmem:[%s2384_s26 + $0x98] sm:$0xff] %vm459_vm0, %v1201_v26 }
 0x308   : > { %v1168_v42 = vpop.trf.xlu1 }
 0x309   : > { %1216 = vst.msk [vmem:[%s2384_s26 + $0x10] sm:$0xff] %vm459_vm0, %v1168_v42 }
 0x30e   : > { %v1202_v45 = vpop.trf.xlu2 }
 0x30f   : > { %1234 = vst.msk [vmem:[%s2384_s26 + $0xa0] sm:$0xff] %vm459_vm0, %v1202_v45 }
 0x310   : > { %v1169_v19 = vpop.trf.xlu1 }
 0x311   : > { %1217 = vst.msk [vmem:[%s2384_s26 + $0x18] sm:$0xff] %vm459_vm0, %v1169_v19 }
 0x316   : > { %v1203_v20 = vpop.trf.xlu2 }
 0x317   : > { %1235 = vst.msk [vmem:[%s2384_s26 + $0xa8] sm:$0xff] %vm459_vm0, %v1203_v20 }
 0x318   : > { %v1170_v22 = vpop.trf.xlu1 }
 0x319   : > { %1218 = vst.msk [vmem:[%s2384_s26 + $0x20] sm:$0xff] %vm459_vm0, %v1170_v22 }
 0x31e   : > { %v1204_v25 = vpop.trf.xlu2 }
 0x31f   : > { %1236 = vst.msk [vmem:[%s2384_s26 + $0xb0] sm:$0xff] %vm459_vm0, %v1204_v25 }
 0x320   : > { %v1171_v8 = vpop.trf.xlu1 }
 0x321   : > { %1219 = vst.msk [vmem:[%s2384_s26 + $0x28] sm:$0xff] %vm459_vm0, %v1171_v8 }
 0x326   : > { %v1205_v56 = vpop.trf.xlu2 }
 0x327   : > { %1237 = vst.msk [vmem:[%s2384_s26 + $0xb8] sm:$0xff] %vm459_vm0, %v1205_v56 }
 0x328   : > { %v1172_v27 = vpop.trf.xlu1 }
 0x329   : > { %1220 = vst.msk [vmem:[%s2384_s26 + $0x30] sm:$0xff] %vm459_vm0, %v1172_v27 }
 0x32e   : > { %v1206_v49 = vpop.trf.xlu2 }
 0x32f   : > { %1238 = vst.msk [vmem:[%s2384_s26 + $0xc0] sm:$0xff] %vm459_vm0, %v1206_v49 }
 0x330   : > { %v1173_v53 = vpop.trf.xlu1 }
 0x331   : > { %1221 = vst.msk [vmem:[%s2384_s26 + $0x38] sm:$0xff] %vm459_vm0, %v1173_v53 }
 0x336   : > { %v1207_v54 = vpop.trf.xlu2 }
 0x337   : > { %1239 = vst.msk [vmem:[%s2384_s26 + $0xc8] sm:$0xff] %vm459_vm0, %v1207_v54 }
 0x338   : > { %v1174_v2 = vpop.trf.xlu1 }
 0x339   : > { %1222 = vst.msk [vmem:[%s2384_s26 + $0x40] sm:$0xff] %vm459_vm0, %v1174_v2 }
 0x33e   : > { %v1208_v52 = vpop.trf.xlu2 }
 0x33f   : > { %1240 = vst.msk [vmem:[%s2384_s26 + $0xd0] sm:$0xff] %vm459_vm0, %v1208_v52 }
 0x340   : > { %v1175_v28 = vpop.trf.xlu1 }
 0x341   : > { %1223 = vst.msk [vmem:[%s2384_s26 + $0x48] sm:$0xff] %vm459_vm0, %v1175_v28 }
 0x346   : > { %v1209_v29 = vpop.trf.xlu2 }
 0x347   : > { %1241 = vst.msk [vmem:[%s2384_s26 + $0xd8] sm:$0xff] %vm459_vm0, %v1209_v29 }
 0x348   : > { %v1176_v31 = vpop.trf.xlu1 }
 0x349   : > { %1224 = vst.msk [vmem:[%s2384_s26 + $0x50] sm:$0xff] %vm459_vm0, %v1176_v31 }
 0x34e   : > { %v1210_v33 = vpop.trf.xlu2 }
 0x34f   : > { %1242 = vst.msk [vmem:[%s2384_s26 + $0xe0] sm:$0xff] %vm459_vm0, %v1210_v33 }
 0x350   : > { %v1177_v34 = vpop.trf.xlu1 }
 0x351   : > { %1225 = vst.msk [vmem:[%s2384_s26 + $0x58] sm:$0xff] %vm459_vm0, %v1177_v34 }
 0x356   : > { %v1211_v36 = vpop.trf.xlu2 }
 0x357   : > { %1243 = vst.msk [vmem:[%s2384_s26 + $0xe8] sm:$0xff] %vm459_vm0, %v1211_v36 }
 0x358   : > { %v1178_v58 = vpop.trf.xlu1 }
 0x359   : > { %1226 = vst.msk [vmem:[%s2384_s26 + $0x60] sm:$0xff] %vm459_vm0, %v1178_v58 }
 0x35e   : > { %v1212_v63 = vpop.trf.xlu2 }
 0x35f   : > { %1244 = vst.msk [vmem:[%s2384_s26 + $0xf0] sm:$0xff] %vm459_vm0, %v1212_v63 }
 0x360   : > { %v1179_v37 = vpop.trf.xlu1 }
 0x361   : > { %1227 = vst.msk [vmem:[%s2384_s26 + $0x68] sm:$0xff] %vm459_vm0, %v1179_v37 }
 0x366   : > { %v1213_v39 = vpop.trf.xlu2 }
 0x367   : > { %1245 = vst.msk [vmem:[%s2384_s26 + $0xf8] sm:$0xff] %vm459_vm0, %v1213_v39 }
 0x368   : > { %v1180_v40 = vpop.trf.xlu1 }
 0x369   : > { %1228 = vst.msk [vmem:[%s2384_s26 + $0x70] sm:$0xff] %vm459_vm0, %v1180_v40 }
 0x370   : > { %v1181_v41 = vpop.trf.xlu1 }
 0x371   : > { %1229 = vst.msk [vmem:[%s2384_s26 + $0x78] sm:$0xff] %vm459_vm0, %v1181_v41 }
 0x372 PF: > { %s15_s20 = sadd.s32 1, %s1768_s20   ;;  %s2465_s18 = smov %s1764_s19 }
 0x373   : > { %p12_p5 = scmp.ge.s32.totalorder %s15_s20, 4   ;;  %s2466_s19 = smov %s2468_s21 }
 0x375   :  { %14 = sbr.rel (!%p12_p5) target bundleno = 2 (0x2), region = 70 }

</bundles_post_ra>
